<compile_context>
chip_gen: v7x
topology: tpu7x:2x2x1
jax: 0.10.0
libtpu: 0.0.40
codegen_flags: <defaults>
</compile_context>

<pallas_src>
import functools

import numpy as np

import jax
import jax.numpy as jnp
from jax.experimental import pallas as pl
from jax.experimental.pallas import tpu as pltpu


def autopad(k, p=None, d=1):
    """Pad to 'same' shape outputs (mirrors the PyTorch helper)."""
    if d > 1:
        k = d * (k - 1) + 1 if isinstance(k, int) else [d * (x - 1) + 1 for x in k]
    if p is None:
        p = k // 2 if isinstance(k, int) else [x // 2 for x in k]
    return p


def _conv_bn_silu_kernel(x_ref, w_ref, mask_ref, scale_ref, bias_ref, o_ref,
                         *, W, HW, KH, KW, d, pad, full_taps, act):
    """One batch element per grid step.

    x_ref:     (1, Cin, H*W)        flattened NCHW input (original dtype)
    w_ref:     (KH*KW, Cout, Cin)   per-tap weight slabs, bf16
    mask_ref:  (KH*KW, 1, H*W)      static 0/1 'same'-padding boundary masks
    scale_ref: (Cout, 1)            folded BN scale  gamma / sqrt(var + eps)
    bias_ref:  (Cout, 1)            folded BN bias   beta - mean * scale
    o_ref:     (1, Cout, H*W)       output, lane-dense last dim
    """
    x = x_ref[0]                                     # (Cin, H*W), one load
    acc = None
    for kh in range(KH):
        for kw in range(KW):
            t = kh * KW + kw
            # Static flat shift so row[:, ho*W+wo] == x[:, ho+dh, wo+dw]
            # (dh = kh*d - pad, dw = kw*d - pad) wherever that is in bounds.
            shift = (-((kh * d - pad) * W + (kw * d - pad))) % HW
            row = pltpu.roll(x, shift, axis=1) if shift else x     # XLU slot
            if not full_taps[t]:
                # Zero the halo / roll wrap-around (VPU slot, lane-dense).
                row = row * mask_ref[t]
            y_t = jnp.dot(w_ref[t], row.astype(jnp.bfloat16),
                          preferred_element_type=jnp.float32)      # MXU
            acc = y_t if acc is None else acc + y_t                # f32 accum

    # Fused BatchNorm (eval) affine + SiLU, in f32; lane-dense store.
    y = acc * scale_ref[...] + bias_ref[...]
    if act:
        y = y * jax.nn.sigmoid(y)                                  # EUP slot
    o_ref[0] = y.astype(o_ref.dtype)


def conv_bn_silu(x_nchw, w_oihw, gamma, beta, running_mean, running_var,
                 *, k=3, s=1, p=None, g=1, d=1, act=True, eps=1e-5):
    """Pallas implementation of Conv.forward for stride=1, groups=1 (NCHW)."""
    assert s == 1 and g == 1, "only stride=1, groups=1 supported"
    assert isinstance(k, int), "only square int kernel sizes supported"
    pad = autopad(k, p, d)
    assert isinstance(pad, int), "tuple padding not supported"

    N, Cin, H, W = x_nchw.shape
    Cout, _, KH, KW = w_oihw.shape

    span_h = d * (KH - 1) + 1
    span_w = d * (KW - 1) + 1
    Ho = H + 2 * pad - span_h + 1
    Wo = W + 2 * pad - span_w + 1
    assert Ho > 0 and Wo > 0, "kernel span larger than padded input"
    assert Ho == H and Wo == W, (
        "roll-based 'same' fast path needs Ho==H, Wo==W (autopad + stride 1)")
    HW = H * W

    # Per-tap weight slabs (KH*KW, Cout, Cin); bf16 for the MXU (tiny one-time
    # prep on constants).
    w_tap = jnp.transpose(w_oihw, (2, 3, 0, 1)).reshape(KH * KW, Cout, Cin)
    w_tap = w_tap.astype(jnp.bfloat16)

    # Fold eval-mode BatchNorm into a per-channel scale / bias pair (f32).
    inv_std = 1.0 / jnp.sqrt(running_var.astype(jnp.float32) + eps)
    scale_1d = gamma.astype(jnp.float32) * inv_std
    bias_1d = beta.astype(jnp.float32) - running_mean.astype(jnp.float32) * scale_1d
    scale = scale_1d.reshape(Cout, 1)
    bias = bias_1d.reshape(Cout, 1)

    # Static 'same'-padding boundary masks per tap, precomputed on host
    # (also kills the roll wrap-around positions, which lie exactly in the
    # out-of-bounds region).  Taps whose mask is all-ones skip the multiply.
    hh = np.arange(H).reshape(H, 1)
    ww = np.arange(W).reshape(1, W)
    mask_list = []
    for kh in range(KH):
        for kw in range(KW):
            dh, dw = kh * d - pad, kw * d - pad
            m = ((hh + dh >= 0) & (hh + dh < H) &
                 (ww + dw >= 0) & (ww + dw < W))
            mask_list.append(m.reshape(1, HW))
    masks_np = np.stack(mask_list, axis=0)                     # (KH*KW, 1, HW)
    full_taps = tuple(bool(m.all()) for m in masks_np)
    mask_arr = jnp.asarray(masks_np.astype(np.float32), dtype=x_nchw.dtype)

    # Free, contiguous metadata reshape — lane-dense (H*W) last dim.
    x_flat = x_nchw.reshape(N, Cin, HW)

    kernel = functools.partial(
        _conv_bn_silu_kernel,
        W=W, HW=HW, KH=KH, KW=KW, d=d, pad=pad,
        full_taps=full_taps, act=bool(act))

    out_flat = pl.pallas_call(
        kernel,
        out_shape=jax.ShapeDtypeStruct((N, Cout, HW), x_nchw.dtype),
        grid_spec=pltpu.PrefetchScalarGridSpec(
            num_scalar_prefetch=0,
            grid=(N,),
            in_specs=[
                pl.BlockSpec((1, Cin, HW), lambda n: (n, 0, 0)),
                pl.BlockSpec((KH * KW, Cout, Cin), lambda n: (0, 0, 0)),
                pl.BlockSpec((KH * KW, 1, HW), lambda n: (0, 0, 0)),
                pl.BlockSpec((Cout, 1), lambda n: (0, 0)),
                pl.BlockSpec((Cout, 1), lambda n: (0, 0)),
            ],
            out_specs=pl.BlockSpec((1, Cout, HW), lambda n: (n, 0, 0)),
        ),
        compiler_params=pltpu.CompilerParams(
            dimension_semantics=("parallel",),
            vmem_limit_bytes=48 * 1024 * 1024),
    )(x_flat, w_tap, mask_arr, scale, bias)

    # Contiguous (free) metadata reshape back to NCHW — no transpose needed.
    return out_flat.reshape(N, Cout, Ho, Wo)


def _reference(x_nchw, w_oihw, gamma, beta, running_mean, running_var,
               *, k, d, eps=1e-5, conv_dtype=jnp.float32):
    """Pure-JAX reference (Conv2d -> BN(eval) -> SiLU) in NCHW."""
    pad = autopad(k, None, d)
    y = jax.lax.conv_general_dilated(
        x_nchw.astype(conv_dtype), w_oihw.astype(conv_dtype),
        window_strides=(1, 1),
        padding=[(pad, pad), (pad, pad)], rhs_dilation=(d, d),
        dimension_numbers=("NCHW", "OIHW", "NCHW"),
        preferred_element_type=jnp.float32)
    scale = gamma / jnp.sqrt(running_var + eps)
    bias = beta - running_mean * scale
    y = y * scale[None, :, None, None] + bias[None, :, None, None]
    return y * jax.nn.sigmoid(y)


if __name__ == "__main__":
    # Conv(c1=4, c2=8, k=3) — stride 1, autopad=1, dilation 1, SiLU act.
    N, C1, H, W = 2, 4, 16, 16
    C2, K, D = 8, 3, 1

    key = jax.random.PRNGKey(0)
    k_x, k_w, k_g, k_b, k_m, k_v = jax.random.split(key, 6)

    x = jax.random.normal(k_x, (N, C1, H, W), dtype=jnp.float32)
    # Deterministic synthetic parameters (module __init__ shapes).
    conv_w = jax.random.normal(k_w, (C2, C1, K, K), dtype=jnp.float32) * 0.1
    bn_gamma = 1.0 + 0.1 * jax.random.normal(k_g, (C2,), dtype=jnp.float32)
    bn_beta = 0.1 * jax.random.normal(k_b, (C2,), dtype=jnp.float32)
    bn_mean = 0.05 * jax.random.normal(k_m, (C2,), dtype=jnp.float32)
    bn_var = 1.0 + 0.1 * jax.random.uniform(k_v, (C2,), dtype=jnp.float32)

    out = conv_bn_silu(x, conv_w, bn_gamma, bn_beta, bn_mean, bn_var,
                       k=K, s=1, p=None, g=1, d=D)
    out = jax.block_until_ready(out)
    assert out.shape == (N, C2, H, W)

    # Tight check vs. a reference using the same bf16 matmul inputs / f32 accum.
    ref_bf16 = _reference(x, conv_w, bn_gamma, bn_beta, bn_mean, bn_var,
                          k=K, d=D, conv_dtype=jnp.bfloat16)
    assert jnp.allclose(out, ref_bf16, atol=1e-3, rtol=1e-3), (
        float(jnp.max(jnp.abs(out - ref_bf16))))

    # Loose check vs. the pure-f32 PyTorch-equivalent reference.
    ref_f32 = _reference(x, conv_w, bn_gamma, bn_beta, bn_mean, bn_var,
                         k=K, d=D, conv_dtype=jnp.float32)
    assert jnp.allclose(out, ref_f32, atol=5e-2, rtol=5e-2), (
        float(jnp.max(jnp.abs(out - ref_f32))))

    print("KERNEL_OK")
</pallas_src>

<mosaic_0001>
module attributes {stable_mosaic.version = 11 : i64} {
  func.func @_conv_bn_silu_kernel(%arg0: i32, %arg1: memref<1x4x256xf32, #tpu.memory_space<vmem>>, %arg2: memref<9x8x4xbf16, #tpu.memory_space<vmem>>, %arg3: memref<9x1x256xf32, #tpu.memory_space<vmem>>, %arg4: memref<8x1xf32, #tpu.memory_space<vmem>>, %arg5: memref<8x1xf32, #tpu.memory_space<vmem>>, %arg6: memref<1x8x256xf32, #tpu.memory_space<vmem>>) attributes {dimension_semantics = [#tpu.dimension_semantics<parallel>], iteration_bounds = array<i64: 2>, scalar_prefetch = 0 : i64, scratch_operands = 0 : i64, tpu.core_type = #tpu.core_type<tc>, window_params = [{transform_indices = @transform_0, window_bounds = array<i64: 1, 4, 256>}, {pipeline_mode = #tpu.pipeline_mode<synchronous>, transform_indices = @transform_1, window_bounds = array<i64: 9, 8, 4>}, {pipeline_mode = #tpu.pipeline_mode<synchronous>, transform_indices = @transform_2, window_bounds = array<i64: 9, 1, 256>}, {pipeline_mode = #tpu.pipeline_mode<synchronous>, transform_indices = @transform_3, window_bounds = array<i64: 8, 1>}, {pipeline_mode = #tpu.pipeline_mode<synchronous>, transform_indices = @transform_4, window_bounds = array<i64: 8, 1>}, {transform_indices = @transform_5, window_bounds = array<i64: 1, 8, 256>}]} {
    %c0 = arith.constant 0 : index
    %c0_0 = arith.constant 0 : index
    %c0_1 = arith.constant 0 : index
    %0 = vector.load %arg1[%c0, %c0_0, %c0_1] : memref<1x4x256xf32, #tpu.memory_space<vmem>>, vector<1x4x256xf32>
    %1 = vector.shape_cast %0 : vector<1x4x256xf32> to vector<4x256xf32>
    %c17_i32 = arith.constant 17 : i32
    %2 = tpu.dynamic_rotate %1 by %c17_i32 dim 1 : vector<4x256xf32>, i32 -> vector<4x256xf32>
    %c0_2 = arith.constant 0 : index
    %c0_3 = arith.constant 0 : index
    %c0_4 = arith.constant 0 : index
    %3 = vector.load %arg3[%c0_2, %c0_3, %c0_4] : memref<9x1x256xf32, #tpu.memory_space<vmem>>, vector<1x1x256xf32>
    %4 = vector.shape_cast %3 : vector<1x1x256xf32> to vector<1x256xf32>
    %5 = vector.broadcast %4 : vector<1x256xf32> to vector<4x256xf32>
    %6 = arith.mulf %2, %5 : vector<4x256xf32>
    %c0_5 = arith.constant 0 : index
    %c0_6 = arith.constant 0 : index
    %c0_7 = arith.constant 0 : index
    %7 = vector.load %arg2[%c0_5, %c0_6, %c0_7] : memref<9x8x4xbf16, #tpu.memory_space<vmem>>, vector<1x8x4xbf16>
    %8 = vector.shape_cast %7 : vector<1x8x4xbf16> to vector<8x4xbf16>
    %9 = arith.truncf %6 : vector<4x256xf32> to vector<4x256xbf16>
    %cst = arith.constant dense<0.000000e+00> : vector<8x256xf32>
    %10 = tpu.matmul %8, %9, %cst {dimension_numbers = #tpu.dot_dimension_numbers<[1], [0], [0], [1], [0, 0, 1, 1], [], []>} : vector<8x4xbf16>, vector<4x256xbf16>, vector<8x256xf32> -> vector<8x256xf32>
    %c16_i32 = arith.constant 16 : i32
    %11 = tpu.dynamic_rotate %1 by %c16_i32 dim 1 : vector<4x256xf32>, i32 -> vector<4x256xf32>
    %c1 = arith.constant 1 : index
    %c0_8 = arith.constant 0 : index
    %c0_9 = arith.constant 0 : index
    %12 = vector.load %arg3[%c1, %c0_8, %c0_9] : memref<9x1x256xf32, #tpu.memory_space<vmem>>, vector<1x1x256xf32>
    %13 = vector.shape_cast %12 : vector<1x1x256xf32> to vector<1x256xf32>
    %14 = vector.broadcast %13 : vector<1x256xf32> to vector<4x256xf32>
    %15 = arith.mulf %11, %14 : vector<4x256xf32>
    %c1_10 = arith.constant 1 : index
    %c0_11 = arith.constant 0 : index
    %c0_12 = arith.constant 0 : index
    %16 = vector.load %arg2[%c1_10, %c0_11, %c0_12] : memref<9x8x4xbf16, #tpu.memory_space<vmem>>, vector<1x8x4xbf16>
    %17 = vector.shape_cast %16 : vector<1x8x4xbf16> to vector<8x4xbf16>
    %18 = arith.truncf %15 : vector<4x256xf32> to vector<4x256xbf16>
    %cst_13 = arith.constant dense<0.000000e+00> : vector<8x256xf32>
    %19 = tpu.matmul %17, %18, %cst_13 {dimension_numbers = #tpu.dot_dimension_numbers<[1], [0], [0], [1], [0, 0, 1, 1], [], []>} : vector<8x4xbf16>, vector<4x256xbf16>, vector<8x256xf32> -> vector<8x256xf32>
    %20 = arith.addf %10, %19 : vector<8x256xf32>
    %c15_i32 = arith.constant 15 : i32
    %21 = tpu.dynamic_rotate %1 by %c15_i32 dim 1 : vector<4x256xf32>, i32 -> vector<4x256xf32>
    %c2 = arith.constant 2 : index
    %c0_14 = arith.constant 0 : index
    %c0_15 = arith.constant 0 : index
    %22 = vector.load %arg3[%c2, %c0_14, %c0_15] : memref<9x1x256xf32, #tpu.memory_space<vmem>>, vector<1x1x256xf32>
    %23 = vector.shape_cast %22 : vector<1x1x256xf32> to vector<1x256xf32>
    %24 = vector.broadcast %23 : vector<1x256xf32> to vector<4x256xf32>
    %25 = arith.mulf %21, %24 : vector<4x256xf32>
    %c2_16 = arith.constant 2 : index
    %c0_17 = arith.constant 0 : index
    %c0_18 = arith.constant 0 : index
    %26 = vector.load %arg2[%c2_16, %c0_17, %c0_18] : memref<9x8x4xbf16, #tpu.memory_space<vmem>>, vector<1x8x4xbf16>
    %27 = vector.shape_cast %26 : vector<1x8x4xbf16> to vector<8x4xbf16>
    %28 = arith.truncf %25 : vector<4x256xf32> to vector<4x256xbf16>
    %cst_19 = arith.constant dense<0.000000e+00> : vector<8x256xf32>
    %29 = tpu.matmul %27, %28, %cst_19 {dimension_numbers = #tpu.dot_dimension_numbers<[1], [0], [0], [1], [0, 0, 1, 1], [], []>} : vector<8x4xbf16>, vector<4x256xbf16>, vector<8x256xf32> -> vector<8x256xf32>
    %30 = arith.addf %20, %29 : vector<8x256xf32>
    %c1_i32 = arith.constant 1 : i32
    %31 = tpu.dynamic_rotate %1 by %c1_i32 dim 1 : vector<4x256xf32>, i32 -> vector<4x256xf32>
    %c3 = arith.constant 3 : index
    %c0_20 = arith.constant 0 : index
    %c0_21 = arith.constant 0 : index
    %32 = vector.load %arg3[%c3, %c0_20, %c0_21] : memref<9x1x256xf32, #tpu.memory_space<vmem>>, vector<1x1x256xf32>
    %33 = vector.shape_cast %32 : vector<1x1x256xf32> to vector<1x256xf32>
    %34 = vector.broadcast %33 : vector<1x256xf32> to vector<4x256xf32>
    %35 = arith.mulf %31, %34 : vector<4x256xf32>
    %c3_22 = arith.constant 3 : index
    %c0_23 = arith.constant 0 : index
    %c0_24 = arith.constant 0 : index
    %36 = vector.load %arg2[%c3_22, %c0_23, %c0_24] : memref<9x8x4xbf16, #tpu.memory_space<vmem>>, vector<1x8x4xbf16>
    %37 = vector.shape_cast %36 : vector<1x8x4xbf16> to vector<8x4xbf16>
    %38 = arith.truncf %35 : vector<4x256xf32> to vector<4x256xbf16>
    %cst_25 = arith.constant dense<0.000000e+00> : vector<8x256xf32>
    %39 = tpu.matmul %37, %38, %cst_25 {dimension_numbers = #tpu.dot_dimension_numbers<[1], [0], [0], [1], [0, 0, 1, 1], [], []>} : vector<8x4xbf16>, vector<4x256xbf16>, vector<8x256xf32> -> vector<8x256xf32>
    %40 = arith.addf %30, %39 : vector<8x256xf32>
    %c4 = arith.constant 4 : index
    %c0_26 = arith.constant 0 : index
    %c0_27 = arith.constant 0 : index
    %41 = vector.load %arg2[%c4, %c0_26, %c0_27] : memref<9x8x4xbf16, #tpu.memory_space<vmem>>, vector<1x8x4xbf16>
    %42 = vector.shape_cast %41 : vector<1x8x4xbf16> to vector<8x4xbf16>
    %43 = arith.truncf %1 : vector<4x256xf32> to vector<4x256xbf16>
    %cst_28 = arith.constant dense<0.000000e+00> : vector<8x256xf32>
    %44 = tpu.matmul %42, %43, %cst_28 {dimension_numbers = #tpu.dot_dimension_numbers<[1], [0], [0], [1], [0, 0, 1, 1], [], []>} : vector<8x4xbf16>, vector<4x256xbf16>, vector<8x256xf32> -> vector<8x256xf32>
    %45 = arith.addf %40, %44 : vector<8x256xf32>
    %c255_i32 = arith.constant 255 : i32
    %46 = tpu.dynamic_rotate %1 by %c255_i32 dim 1 : vector<4x256xf32>, i32 -> vector<4x256xf32>
    %c5 = arith.constant 5 : index
    %c0_29 = arith.constant 0 : index
    %c0_30 = arith.constant 0 : index
    %47 = vector.load %arg3[%c5, %c0_29, %c0_30] : memref<9x1x256xf32, #tpu.memory_space<vmem>>, vector<1x1x256xf32>
    %48 = vector.shape_cast %47 : vector<1x1x256xf32> to vector<1x256xf32>
    %49 = vector.broadcast %48 : vector<1x256xf32> to vector<4x256xf32>
    %50 = arith.mulf %46, %49 : vector<4x256xf32>
    %c5_31 = arith.constant 5 : index
    %c0_32 = arith.constant 0 : index
    %c0_33 = arith.constant 0 : index
    %51 = vector.load %arg2[%c5_31, %c0_32, %c0_33] : memref<9x8x4xbf16, #tpu.memory_space<vmem>>, vector<1x8x4xbf16>
    %52 = vector.shape_cast %51 : vector<1x8x4xbf16> to vector<8x4xbf16>
    %53 = arith.truncf %50 : vector<4x256xf32> to vector<4x256xbf16>
    %cst_34 = arith.constant dense<0.000000e+00> : vector<8x256xf32>
    %54 = tpu.matmul %52, %53, %cst_34 {dimension_numbers = #tpu.dot_dimension_numbers<[1], [0], [0], [1], [0, 0, 1, 1], [], []>} : vector<8x4xbf16>, vector<4x256xbf16>, vector<8x256xf32> -> vector<8x256xf32>
    %55 = arith.addf %45, %54 : vector<8x256xf32>
    %c241_i32 = arith.constant 241 : i32
    %56 = tpu.dynamic_rotate %1 by %c241_i32 dim 1 : vector<4x256xf32>, i32 -> vector<4x256xf32>
    %c6 = arith.constant 6 : index
    %c0_35 = arith.constant 0 : index
    %c0_36 = arith.constant 0 : index
    %57 = vector.load %arg3[%c6, %c0_35, %c0_36] : memref<9x1x256xf32, #tpu.memory_space<vmem>>, vector<1x1x256xf32>
    %58 = vector.shape_cast %57 : vector<1x1x256xf32> to vector<1x256xf32>
    %59 = vector.broadcast %58 : vector<1x256xf32> to vector<4x256xf32>
    %60 = arith.mulf %56, %59 : vector<4x256xf32>
    %c6_37 = arith.constant 6 : index
    %c0_38 = arith.constant 0 : index
    %c0_39 = arith.constant 0 : index
    %61 = vector.load %arg2[%c6_37, %c0_38, %c0_39] : memref<9x8x4xbf16, #tpu.memory_space<vmem>>, vector<1x8x4xbf16>
    %62 = vector.shape_cast %61 : vector<1x8x4xbf16> to vector<8x4xbf16>
    %63 = arith.truncf %60 : vector<4x256xf32> to vector<4x256xbf16>
    %cst_40 = arith.constant dense<0.000000e+00> : vector<8x256xf32>
    %64 = tpu.matmul %62, %63, %cst_40 {dimension_numbers = #tpu.dot_dimension_numbers<[1], [0], [0], [1], [0, 0, 1, 1], [], []>} : vector<8x4xbf16>, vector<4x256xbf16>, vector<8x256xf32> -> vector<8x256xf32>
    %65 = arith.addf %55, %64 : vector<8x256xf32>
    %c240_i32 = arith.constant 240 : i32
    %66 = tpu.dynamic_rotate %1 by %c240_i32 dim 1 : vector<4x256xf32>, i32 -> vector<4x256xf32>
    %c7 = arith.constant 7 : index
    %c0_41 = arith.constant 0 : index
    %c0_42 = arith.constant 0 : index
    %67 = vector.load %arg3[%c7, %c0_41, %c0_42] : memref<9x1x256xf32, #tpu.memory_space<vmem>>, vector<1x1x256xf32>
    %68 = vector.shape_cast %67 : vector<1x1x256xf32> to vector<1x256xf32>
    %69 = vector.broadcast %68 : vector<1x256xf32> to vector<4x256xf32>
    %70 = arith.mulf %66, %69 : vector<4x256xf32>
    %c7_43 = arith.constant 7 : index
    %c0_44 = arith.constant 0 : index
    %c0_45 = arith.constant 0 : index
    %71 = vector.load %arg2[%c7_43, %c0_44, %c0_45] : memref<9x8x4xbf16, #tpu.memory_space<vmem>>, vector<1x8x4xbf16>
    %72 = vector.shape_cast %71 : vector<1x8x4xbf16> to vector<8x4xbf16>
    %73 = arith.truncf %70 : vector<4x256xf32> to vector<4x256xbf16>
    %cst_46 = arith.constant dense<0.000000e+00> : vector<8x256xf32>
    %74 = tpu.matmul %72, %73, %cst_46 {dimension_numbers = #tpu.dot_dimension_numbers<[1], [0], [0], [1], [0, 0, 1, 1], [], []>} : vector<8x4xbf16>, vector<4x256xbf16>, vector<8x256xf32> -> vector<8x256xf32>
    %75 = arith.addf %65, %74 : vector<8x256xf32>
    %c239_i32 = arith.constant 239 : i32
    %76 = tpu.dynamic_rotate %1 by %c239_i32 dim 1 : vector<4x256xf32>, i32 -> vector<4x256xf32>
    %c8 = arith.constant 8 : index
    %c0_47 = arith.constant 0 : index
    %c0_48 = arith.constant 0 : index
    %77 = vector.load %arg3[%c8, %c0_47, %c0_48] : memref<9x1x256xf32, #tpu.memory_space<vmem>>, vector<1x1x256xf32>
    %78 = vector.shape_cast %77 : vector<1x1x256xf32> to vector<1x256xf32>
    %79 = vector.broadcast %78 : vector<1x256xf32> to vector<4x256xf32>
    %80 = arith.mulf %76, %79 : vector<4x256xf32>
    %c8_49 = arith.constant 8 : index
    %c0_50 = arith.constant 0 : index
    %c0_51 = arith.constant 0 : index
    %81 = vector.load %arg2[%c8_49, %c0_50, %c0_51] : memref<9x8x4xbf16, #tpu.memory_space<vmem>>, vector<1x8x4xbf16>
    %82 = vector.shape_cast %81 : vector<1x8x4xbf16> to vector<8x4xbf16>
    %83 = arith.truncf %80 : vector<4x256xf32> to vector<4x256xbf16>
    %cst_52 = arith.constant dense<0.000000e+00> : vector<8x256xf32>
    %84 = tpu.matmul %82, %83, %cst_52 {dimension_numbers = #tpu.dot_dimension_numbers<[1], [0], [0], [1], [0, 0, 1, 1], [], []>} : vector<8x4xbf16>, vector<4x256xbf16>, vector<8x256xf32> -> vector<8x256xf32>
    %85 = arith.addf %75, %84 : vector<8x256xf32>
    %c0_53 = arith.constant 0 : index
    %c0_54 = arith.constant 0 : index
    %86 = vector.load %arg4[%c0_53, %c0_54] : memref<8x1xf32, #tpu.memory_space<vmem>>, vector<8x1xf32>
    %87 = vector.broadcast %86 : vector<8x1xf32> to vector<8x256xf32>
    %88 = arith.mulf %85, %87 : vector<8x256xf32>
    %c0_55 = arith.constant 0 : index
    %c0_56 = arith.constant 0 : index
    %89 = vector.load %arg5[%c0_55, %c0_56] : memref<8x1xf32, #tpu.memory_space<vmem>>, vector<8x1xf32>
    %90 = vector.broadcast %89 : vector<8x1xf32> to vector<8x256xf32>
    %91 = arith.addf %88, %90 : vector<8x256xf32>
    %92 = arith.negf %91 : vector<8x256xf32>
    %93 = math.exp %92 : vector<8x256xf32>
    %cst_57 = arith.constant 1.000000e+00 : f32
    %94 = vector.broadcast %cst_57 : f32 to vector<8x256xf32>
    %95 = arith.addf %94, %93 : vector<8x256xf32>
    %96 = arith.divf %94, %95 : vector<8x256xf32>
    %97 = arith.mulf %91, %96 : vector<8x256xf32>
    %c0_58 = arith.constant 0 : index
    %c0_59 = arith.constant 0 : index
    %c0_60 = arith.constant 0 : index
    %98 = vector.load %arg6[%c0_58, %c0_59, %c0_60] : memref<1x8x256xf32, #tpu.memory_space<vmem>>, vector<1x8x256xf32>
    %99 = vector.shape_cast %98 : vector<1x8x256xf32> to vector<8x256xf32>
    %100 = vector.shape_cast %97 : vector<8x256xf32> to vector<1x8x256xf32>
    tpu.vector_store %arg6[%c0_58, %c0_59, %c0_60], %100 {strides = array<i32>} : memref<1x8x256xf32, #tpu.memory_space<vmem>>, vector<1x8x256xf32>,
    return
  }
  func.func @transform_0(%arg0: i32) -> (i32, i32, i32) {
    %c0_i32 = arith.constant 0 : i32
    %c0_i32_0 = arith.constant 0 : i32
    %c0_i32_1 = arith.constant 0 : i32
    return %arg0, %c0_i32, %c0_i32_0 : i32, i32, i32
  }
  func.func @transform_1(%arg0: i32) -> (i32, i32, i32) {
    %c0_i32 = arith.constant 0 : i32
    %c0_i32_0 = arith.constant 0 : i32
    %c0_i32_1 = arith.constant 0 : i32
    %c0_i32_2 = arith.constant 0 : i32
    return %c0_i32, %c0_i32_0, %c0_i32_1 : i32, i32, i32
  }
  func.func @transform_2(%arg0: i32) -> (i32, i32, i32) {
    %c0_i32 = arith.constant 0 : i32
    %c0_i32_0 = arith.constant 0 : i32
    %c0_i32_1 = arith.constant 0 : i32
    %c0_i32_2 = arith.constant 0 : i32
    return %c0_i32, %c0_i32_0, %c0_i32_1 : i32, i32, i32
  }
  func.func @transform_3(%arg0: i32) -> (i32, i32) {
    %c0_i32 = arith.constant 0 : i32
    %c0_i32_0 = arith.constant 0 : i32
    %c0_i32_1 = arith.constant 0 : i32
    return %c0_i32, %c0_i32_0 : i32, i32
  }
  func.func @transform_4(%arg0: i32) -> (i32, i32) {
    %c0_i32 = arith.constant 0 : i32
    %c0_i32_0 = arith.constant 0 : i32
    %c0_i32_1 = arith.constant 0 : i32
    return %c0_i32, %c0_i32_0 : i32, i32
  }
  func.func @transform_5(%arg0: i32) -> (i32, i32, i32) {
    %c0_i32 = arith.constant 0 : i32
    %c0_i32_0 = arith.constant 0 : i32
    %c0_i32_1 = arith.constant 0 : i32
    return %arg0, %c0_i32, %c0_i32_0 : i32, i32, i32
  }
}

</mosaic_0001>

<bundles_post_ra>
// kernel: tpu_custom_call.1
= control target key start
LH: loop header
LB: loop body
LE: loop exit
PB: predicated region body
PF: predicated region fallthrough
CT: control target
= control target key end

     0   :  { %10 = vsyncpa [#allocation3], 0  ;;  %s1495_s0 = inlined_call_operand.vmem [shape: f32[2,4,256], index: 0, kind: input, shape index: {}]   ;;  %s1496_s1 = inlined_call_operand.vmem [shape: bf16[9,8,4], index: 1, kind: input, shape index: {}]   ;;  %s1497_s2 = inlined_call_operand.vmem [shape: f32[9,1,256], index: 2, kind: input, shape index: {}]   ;;  %s1498_s3 = inlined_call_operand.vmem [shape: f32[8,1], index: 3, kind: input, shape index: {}]   ;;  %s1499_s4 = inlined_call_operand.vmem [shape: f32[8,1], index: 4, kind: input, shape index: {}]   ;;  %s1500_s5 = inlined_call_operand.hbm [shape: f32[2,8,256], index: 5, kind: output, shape index: {}]  }
   0x1   :  { %12 = vsyncpa [#allocation3 + $0x1], 0  ;;  %s1254_s18 = smov 0   ;;  %s1256_s19 = smov 0  }
   0x2   :  { %s1258_s20 = smov 0   ;;  %s1260_s21 = smov 0  }
   0x3 LB: > { %s1275_s22 = sadd.s32 4294967295, %s1212_s21   ;;  %s1012_s23 = sadd.s32 4294967294, %s1212_s21   ;;  %s1212_s21 = sphi %s1260_s21, %s1506_s21   ;;  %s1208_s20 = sphi %s1258_s20, %s1505_s20   ;;  %s1204_s19 = sphi %s1256_s19, %s1504_s19   ;;  %s1200_s18 = sphi %s1254_s18, %s1503_s18  }
   0x4   : > { %s1279_s24 = sadd.s32 1, %s1212_s21   ;;  %s135_s25 = sadd.s32 1, %s1208_s20 }
   0x5   : > { %s132_s26 = ssub.s32 %s1212_s21, %s1279_s24  ;;  %p145_p0 = scmp.ne.s32.totalorder %s1208_s20, %s1204_s19 }
   0x6   : > { %p133_p1 = scmp.eq.s32.totalorder %s132_s26, 0  ;;  %p146_p2 = scmp.eq.s32.totalorder %s1275_s22, 1 }
   0x7   : > { %p151_p3 = scmp.ne.s32.totalorder %s1204_s19, %s1200_s18  ;;  %p152_p4 = scmp.eq.s32.totalorder %s1012_s23, 1 }
   0x8   : > { %s1290_s27 = scalar_select %p133_p1, %s1208_s20, %s135_s25  }
   0x9   : > { %p1292_p5 = por %p146_p2, %p145_p0  ;;  %p1296_p6 = por %p152_p4, %p151_p3 }
   0xa   : > { %p1015_p7 = scmp.ge.s32.totalorder %s1212_s21, 1  ;;  %p190_p8 = scmp.lt.s32.totalorder %s1212_s21, 3 }
   0xc   : > { %p191_p9 = pnand %p1015_p7, %p190_p8 }
   0xd   : > { %p218_p10 = scmp.lt.s32.totalorder (!%p191_p9), %s1275_s22, 1  ;;  %v1214_v0 = vmov (!%p191_p9), 0   ;;  %s1215_s10 = smov (!%p191_p9), 127   ;;  %vm284_vm0 = vcmask (!%p191_p9), 1041408   ;;  %vm280_vm1 = vcmask (!%p191_p9), 31744   ;;  %v906_v7 = vld [vmem:[%s1498_s3] sm:$0xff] (!%p191_p9)  ;;  %v232_v9 = vlaneseq (!%p191_p9) }
   0xe   : > { %194 = sbr.rel (%p191_p9) target bundleno = 451 (0x1c3), region = 40  ;;  %583 = vmatprep.mubr.bf16.mxu0 (!%p191_p9), %v1214_v0  ;;  %323 = vmatprep.mubr.bf16.mxu1 (!%p191_p9), %v1214_v0  ;;  %s1216_s11 = smov (!%p191_p9), 16   ;;  %v1033_v6 = vld [vmem:[%s1496_s1 + $0x10] sm:$0xf] (!%p191_p9)  ;;  %v914_v8 = vld [vmem:[%s1499_s4] sm:$0xff] (!%p191_p9) }
   0xf   : > { %1139 = vset.pattern.permute.xlu0 (!%p191_p9), %v1214_v0  ;;  %1140 = vset.pattern.permute.xlu1 (!%p191_p9), %v1214_v0  ;;  %s1217_s14 = smov (!%p191_p9), 17   ;;  %s1218_s15 = smov (!%p191_p9), 113   ;;  %v240_v10 = vshrl.u32 (!%p191_p9), %v232_v9, 7  ;;  %v1324_v11 = vand.u32 (!%p191_p9), 127, %v232_v9  ;;  %v1036_v14 = vld [vmem:[%s1497_s2 + $0xa] sm:$0x3] (!%p191_p9) }
  0x10   : > { %s1219_s16 = smov (!%p191_p9), 15   ;;  %s1220_s17 = smov (!%p191_p9), 112   ;;  %v1019_v15 = vld [vmem:[%s1497_s2 + $0x2] sm:$0x3] (!%p191_p9)  ;;  %v237_v18 = vld [vmem:[%s1497_s2] sm:$0x3] (!%p191_p9) }
  0x11   : > { %s1221_s23 = smov (!%p191_p9), 1   ;;  %s1222_s25 = smov (!%p191_p9), 111   ;;  %v1326_v12 = vsub.s32 (!%p191_p9), 0, %v240_v10  ;;  %v1328_v13 = vsub.s32 (!%p191_p9), 1, %v240_v10  ;;  %vm598_vm2 = vcmp.lt.s32.totalorder (!%p191_p9), %v1324_v11, 127  ;;  %vm258_vm3 = vcmp.lt.s32.totalorder (!%p191_p9), %v1324_v11, 16 }
  0x12   : > { %vm234_vm4 = vcmp.lt.s32.totalorder (!%p191_p9), %v1324_v11, 17  ;;  %v1040_v35 = vld [vmem:[%s1497_s2 + $0xc] sm:$0x3] (!%p191_p9)  ;;  %vm676_vm5 = vcmp.lt.s32.totalorder (!%p191_p9), %v1324_v11, 113  ;;  %v1025_v50 = vld [vmem:[%s1497_s2 + $0x4] sm:$0x3] (!%p191_p9) }
  0x13   : > { %v607_v19 = vrot.slane (!%p191_p9), %v1036_v14, %v1326_v12  ;;  %v611_v20 = vrot.slane (!%p191_p9), %v1036_v14, %v1328_v13  ;;  %v267_v21 = vrot.slane (!%p191_p9), %v1019_v15, %v1326_v12  ;;  %v271_v22 = vrot.slane (!%p191_p9), %v1019_v15, %v1328_v13  ;;  %v1020_v51 = vld [vmem:[%s1496_s1 + $0x4] sm:$0xf] (!%p191_p9)  ;;  %v1037_v52 = vld [vmem:[%s1496_s1 + $0x14] sm:$0xf] (!%p191_p9)  ;;  %s215_s8 = sand.u32 (!%p191_p9), 1, %s1204_s19  }
  0x14   : > { %v242_v25 = vrot.slane (!%p191_p9), %v237_v18, %v1326_v12  ;;  %v246_v26 = vrot.slane (!%p191_p9), %v237_v18, %v1328_v13  ;;  %v685_v44 = vrot.slane (!%p191_p9), %v1040_v35, %v1326_v12  ;;  %v689_v45 = vrot.slane (!%p191_p9), %v1040_v35, %v1328_v13 }
  0x15   : > { %s219_s30 = scalar_select %p218_p10, %s1275_s22, 1  ;;  %vm386_vm6 = vcmp.lt.s32.totalorder %v1324_v11, 15  ;;  %v395_v59 = vrot.slane %v1025_v50, %v1326_v12  ;;  %v399_v63 = vrot.slane %v1025_v50, %v1328_v13  ;;  %vm754_vm7 = vcmp.lt.s32.totalorder %v1324_v11, 112  ;;  %v1026_v50 = vld [vmem:[%s1496_s1 + $0x8] sm:$0xf] }
  0x16   : > { %vm464_vm8 = vcmp.lt.s32.totalorder %v1324_v11, 1  ;;  %vm832_vm9 = vcmp.lt.s32.totalorder %v1324_v11, 111 }
  0x17   : > { %s1059_s6 = sshll.u32 %s219_s30, 3 }
  0x18   : > { %s222_s9 = scalar_lea.vmem %s1495_s0, %s1059_s6 }
  0x19   : > { %v224_v1 = vld [vmem:[%s222_s9] sm:$0xff]  ;;  %s1016_s9 = sshll.u32 %s215_s8, 4 }
  0x1a   : > { %594 = vrot.lane.b32.xlu1 %v224_v1, %s1215_s10  ;;  %254 = vrot.lane.b32.xlu0 %v224_v1, %s1216_s11  ;;  %v226_v2 = vcombine.high %v224_v1, %v224_v1  ;;  %v540_v3 = vpack.c.bf16 %v224_v1, %v224_v1 }
  0x1c   : > { %v541_v4 = vpack.c.bf16 %v226_v2, %v226_v2  ;;  %v546_v5 = vsel %vm284_vm0, %v540_v3, 0 }
  0x1e   : > { %596 = vrot.lane.b32.xlu1 %v226_v2, %s1215_s10  ;;  %256 = vrot.lane.b32.xlu0 %v226_v2, %s1216_s11  ;;  %s1060_s10 = sshll.u32 %s1275_s22, 8  ;;  %s217_s11 = scalar_lea.vmem [#allocation2], %s1016_s9 }
  0x1f   : > { %1034 = vmatprep.subr.msk.bf16.mxu0 %vm284_vm0, %v541_v4  ;;  %s953_s12 = sshll.u32 %s217_s11, 4  ;;  %s1455_s12 = int_to_ptr.vmem [resolvable:$true] %s953_s12 }
  0x20   : > { %552 = vmatpush1.bf16.msra.mxu0 %v546_v5  ;;  %s1150_s22 = scalar_lea.vmem %s1455_s12, 256 }
  0x21   : > { %p1151_p11 = scmp.ne.s32.totalorder %s1455_s12, %s1150_s22 }
  0x22   : > { %230 = vrot.lane.b32.xlu1 %v226_v2, %s1217_s14  ;;  %228 = vrot.lane.b32.xlu0 %v224_v1, %s1217_s14 }
  0x23   : > { %1035 = vmatmul.mubr.msk.bf16.vlgmr.msra.gmra.mrb[0].mxu0 %vm280_vm1, %v1033_v6  ;;  %p1152_p12 = pnand %p1151_p11, %p1292_p5 }
  0x24   : > { %661 = vmatprep.mubr.bf16.mxu0 %v1214_v0 }
  0x25   : > { %p1153_p13 = pneg %p1152_p12 }
  0x26   : > { %674 = vrot.lane.b32.xlu1 %v226_v2, %s1218_s15  ;;  %672 = vrot.lane.b32.xlu0 %v224_v1, %s1218_s15  ;;  %s1453_s15 = scalar_lea.hbm %s1500_s5, %s1060_s10 }
  0x2a   : > { %384 = vrot.lane.b32.xlu1 %v226_v2, %s1219_s16  ;;  %382 = vrot.lane.b32.xlu0 %v224_v1, %s1219_s16  ;;  %s939_s16 = scalar_lea.sflag [#allocation3], %s215_s8 }
  0x2e   : > { %752 = vrot.lane.b32.xlu1 %v226_v2, %s1220_s17  ;;  %750 = vrot.lane.b32.xlu0 %v224_v1, %s1220_s17  ;;  %s1223_s17 = smov [#allocation2]  }
  0x32   : > { %462 = vrot.lane.b32.xlu1 %v226_v2, %s1221_s23  ;;  %460 = vrot.lane.b32.xlu0 %v224_v1, %s1221_s23  ;;  %s1154_s23 = sshll.u32 %s1223_s17, 4  ;;  %s1155_s23 = int_to_ptr.vmem [resolvable:$false] %s1154_s23 }
  0x33   : > { %p1157_p0 = scmp.lt.s32.totalorder %s1455_s12, %s1155_s23 }
  0x36   : > { %830 = vrot.lane.b32.xlu1 %v226_v2, %s1222_s25  ;;  %828 = vrot.lane.b32.xlu0 %v224_v1, %s1222_s25  ;;  %v1044_v1 = vld [vmem:[%s1497_s2 + $0xe] sm:$0x3]  ;;  %s1156_s25 = scalar_lea.vmem %s1155_s23, 512 }
  0x37   : > { %v767_v15 = vrot.slane %v1044_v1, %v1328_v13  ;;  %p1158_p1 = scmp.lt.s32.totalorder %s1156_s25, %s1150_s22 }
  0x39   : > { %p1159_p2 = por %p1158_p1, %p1157_p0 }
  0x3a   : > { %909 = vperm.xlu0 %1139, %v906_v7   ;;  %917 = vperm.xlu1 %1140, %v914_v8   ;;  %v763_v8 = vrot.slane %v1044_v1, %v1326_v12 }
  0x3b   : > { %p1160_p3 = pnand %p1159_p2, %p1153_p13 }
  0x8c   : > { %v595_v16 = vpop.permute.xlu1 %594  ;;  %v255_v17 = vpop.permute.xlu0 %254 }
  0x90   : > { %v597_v23 = vpop.permute.xlu1 %596  ;;  %v257_v24 = vpop.permute.xlu0 %256 }
  0x91   : > { %v599_v27 = vsel %vm598_vm2, %v595_v16, %v597_v23  ;;  %v600_v28 = vsel %vm598_vm2, %v597_v23, %v595_v16  ;;  %v259_v29 = vsel %vm258_vm3, %v255_v17, %v257_v24  ;;  %v260_v30 = vsel %vm258_vm3, %v257_v24, %v255_v17  ;;  %v1029_v16 = vld [vmem:[%s1497_s2 + $0x6] sm:$0x3] }
  0x92   : > { %v614_v31 = vmul.f32 %v607_v19, %v599_v27  ;;  %v615_v32 = vmul.f32 %v611_v20, %v600_v28  ;;  %v274_v33 = vmul.f32 %v267_v21, %v260_v30  ;;  %v275_v34 = vmul.f32 %v271_v22, %v259_v29  ;;  %v1041_v27 = vld [vmem:[%s1496_s1 + $0x18] sm:$0xf]  ;;  %v1048_v28 = vld [vmem:[%s1497_s2 + $0x10] sm:$0x3] }
  0x94   : > { %v618_v36 = vpack.c.bf16 %v614_v31, %v614_v31  ;;  %v619_v37 = vpack.c.bf16 %v615_v32, %v615_v32  ;;  %v279_v38 = vpack.c.bf16 %v275_v34, %v275_v34  ;;  %v278_v39 = vpack.c.bf16 %v274_v33, %v274_v33  ;;  %v231_v40 = vpop.permute.xlu1 %230  ;;  %v229_v41 = vpop.permute.xlu0 %228 }
  0x95   : > { %v235_v42 = vsel %vm234_vm4, %v229_v41, %v231_v40  ;;  %v236_v43 = vsel %vm234_vm4, %v231_v40, %v229_v41  ;;  %v473_v33 = vrot.slane %v1029_v16, %v1326_v12  ;;  %v845_v40 = vrot.slane %v1048_v28, %v1328_v13 }
  0x96   : > { %1021 = vmatprep.subr.msk.bf16.mxu1 %vm284_vm0, %v279_v38  ;;  %1038 = vmatprep.subr.msk.bf16.mxu0 %vm284_vm0, %v619_v37  ;;  %v286_v46 = vsel %vm284_vm0, %v278_v39, 0  ;;  %v624_v47 = vsel %vm284_vm0, %v618_v36, 0  ;;  %v249_v48 = vmul.f32 %v242_v25, %v236_v43  ;;  %v250_v49 = vmul.f32 %v246_v26, %v235_v42  ;;  %v251_v26 = vld [vmem:[%s1496_s1] sm:$0xf] }
  0x97   : > { %292 = vmatpush1.bf16.msra.mxu1 %v286_v46  ;;  %630 = vmatpush1.bf16.msra.mxu0 %v624_v47  ;;  %v477_v25 = vrot.slane %v1029_v16, %v1328_v13  ;;  %v841_v39 = vrot.slane %v1048_v28, %v1326_v12 }
  0x98   : > { %v252_v53 = vpack.c.bf16 %v249_v48, %v249_v48  ;;  %v253_v54 = vpack.c.bf16 %v250_v49, %v250_v49  ;;  %v675_v55 = vpop.permute.xlu1 %674  ;;  %v673_v56 = vpop.permute.xlu0 %672 }
  0x99   : > { %v677_v57 = vsel %vm676_vm5, %v673_v56, %v675_v55  ;;  %v678_v58 = vsel %vm676_vm5, %v675_v55, %v673_v56 }
  0x9a   : > { %1022 = vmatmul.mubr.msk.bf16.vlgmr.msra.gmra.mrb[0].mxu1 %vm280_vm1, %v1020_v51  ;;  %1039 = vmatmul.mubr.msk.bf16.vlgmr.msra.gmra.mrb[0].mxu0 %vm280_vm1, %v1037_v52  ;;  %v692_v60 = vmul.f32 %v685_v44, %v677_v57  ;;  %v693_v61 = vmul.f32 %v689_v45, %v678_v58  ;;  %v336_v62 = vsel %vm284_vm0, %v252_v53, 0  ;;  %v1045_v51 = vld [vmem:[%s1496_s1 + $0x1c] sm:$0xf]  ;;  %v1030_v53 = vld [vmem:[%s1496_s1 + $0xc] sm:$0xf] }
  0x9b   : > { %1023 = vmatprep.subr.msk.bf16.mxu1 %vm284_vm0, %v253_v54  ;;  %373 = vmatprep.mubr.bf16.mxu1 %v1214_v0  ;;  %v1049_v54 = vld [vmem:[%s1496_s1 + $0x20] sm:$0xf] }
  0x9c   : > { %v696_v2 = vpack.c.bf16 %v692_v60, %v692_v60  ;;  %v697_v3 = vpack.c.bf16 %v693_v61, %v693_v61  ;;  %342 = vmatpush1.bf16.msra.mxu1 %v336_v62  ;;  %v385_v4 = vpop.permute.xlu1 %384  ;;  %v383_v5 = vpop.permute.xlu0 %382  ;;  %739 = vmatprep.mubr.bf16.mxu0 %v1214_v0 }
  0x9d   : > { %v387_v6 = vsel %vm386_vm6, %v383_v5, %v385_v4  ;;  %v388_v7 = vsel %vm386_vm6, %v385_v4, %v383_v5 }
  0x9e   : > { %1042 = vmatprep.subr.msk.bf16.mxu0 %vm284_vm0, %v697_v3  ;;  %v702_v9 = vsel %vm284_vm0, %v696_v2, 0  ;;  %v402_v10 = vmul.f32 %v395_v59, %v388_v7  ;;  %v403_v14 = vmul.f32 %v399_v63, %v387_v6 }
  0x9f   : > { %708 = vmatpush1.bf16.msra.mxu0 %v702_v9 }
  0xa0   : > { %v406_v17 = vpack.c.bf16 %v402_v10, %v402_v10  ;;  %v407_v18 = vpack.c.bf16 %v403_v14, %v403_v14  ;;  %v753_v19 = vpop.permute.xlu1 %752  ;;  %v751_v20 = vpop.permute.xlu0 %750 }
  0xa1   : > { %v755_v21 = vsel %vm754_vm7, %v751_v20, %v753_v19  ;;  %v756_v22 = vsel %vm754_vm7, %v753_v19, %v751_v20 }
  0xa2   : > { %v770_v23 = vmul.f32 %v763_v8, %v755_v21  ;;  %v771_v24 = vmul.f32 %v767_v15, %v756_v22  ;;  %1027 = vmatprep.subr.msk.bf16.mxu1 %vm284_vm0, %v407_v18  ;;  %v412_v31 = vsel %vm284_vm0, %v406_v17, 0 }
  0xa4   : > { %v774_v29 = vpack.c.bf16 %v770_v23, %v770_v23  ;;  %v775_v30 = vpack.c.bf16 %v771_v24, %v771_v24  ;;  %v463_v32 = vpop.permute.xlu1 %462  ;;  %v461_v34 = vpop.permute.xlu0 %460 }
  0xa5   : > { %v465_v35 = vsel %vm464_vm8, %v461_v34, %v463_v32  ;;  %v466_v36 = vsel %vm464_vm8, %v463_v32, %v461_v34 }
  0xa6   : > { %1024 = vmatmul.mubr.msk.bf16.vlgmr.msra.gmra.mrb[0].mxu1 %vm280_vm1, %v251_v26  ;;  %1043 = vmatmul.mubr.msk.bf16.vlgmr.msra.gmra.mrb[0].mxu0 %vm280_vm1, %v1041_v27  ;;  %v780_v37 = vsel %vm284_vm0, %v774_v29, 0  ;;  %v481_v38 = vmul.f32 %v477_v25, %v465_v35  ;;  %v480_v41 = vmul.f32 %v473_v33, %v466_v36 }
  0xa7   : > { %418 = vmatpush1.bf16.msra.mxu1 %v412_v31  ;;  %1046 = vmatprep.subr.msk.bf16.mxu0 %vm284_vm0, %v775_v30 }
  0xa8   : > { %786 = vmatpush1.bf16.msra.mxu0 %v780_v37  ;;  %v485_v42 = vpack.c.bf16 %v481_v38, %v481_v38  ;;  %449 = vmatprep.mubr.bf16.mxu1 %v1214_v0  ;;  %v831_v43 = vpop.permute.xlu1 %830  ;;  %v829_v44 = vpop.permute.xlu0 %828  ;;  %v484_v47 = vpack.c.bf16 %v480_v41, %v480_v41 }
  0xa9   : > { %817 = vmatprep.mubr.bf16.mxu0 %v1214_v0  ;;  %v833_v45 = vsel %vm832_vm9, %v829_v44, %v831_v43  ;;  %v834_v12 = vsel %vm832_vm9, %v831_v43, %v829_v44 }
  0xaa   : > { %v848_v46 = vmul.f32 %v841_v39, %v833_v45  ;;  %v849_v13 = vmul.f32 %v845_v40, %v834_v12  ;;  %1031 = vmatprep.subr.msk.bf16.mxu1 %vm284_vm0, %v485_v42  ;;  %v490_v11 = vsel %vm284_vm0, %v484_v47, 0 }
  0xac   : > { %v852_v48 = vpack.c.bf16 %v848_v46, %v848_v46  ;;  %v853_v49 = vpack.c.bf16 %v849_v13, %v849_v13 }
  0xae   : > { %1050 = vmatprep.subr.msk.bf16.mxu0 %vm284_vm0, %v853_v49  ;;  %v858_v52 = vsel %vm284_vm0, %v852_v48, 0 }
  0xb2   : > { %1028 = vmatmul.mubr.msk.bf16.vlgmr.msra.gmra.mrb[0].mxu1 %vm280_vm1, %v1026_v50  ;;  %1047 = vmatmul.mubr.msk.bf16.vlgmr.msra.gmra.mrb[0].mxu0 %vm280_vm1, %v1045_v51 }
  0xb3   : > { %496 = vmatpush1.bf16.msra.mxu1 %v490_v11  ;;  %864 = vmatpush1.bf16.msra.mxu0 %v858_v52 }
  0xb4   : > { %527 = vmatprep.mubr.bf16.mxu1 %v1214_v0  ;;  %895 = vmatprep.mubr.bf16.mxu0 %v1214_v0 }
  0xb9   : > { %v910_v55 = vpop.permute.xlu0 %909  ;;  %v918_v56 = vpop.permute.xlu1 %917 }
  0xbe   : > { %1032 = vmatmul.mubr.msk.bf16.vlgmr.msra.gmra.mrb[0].mxu1 %vm280_vm1, %v1030_v53  ;;  %1051 = vmatmul.mubr.msk.bf16.vlgmr.msra.gmra.mrb[0].mxu0 %vm280_vm1, %v1049_v54 }
 0x191   : > { %v529_v57 = vpop.f32.mrb[0].mxu1  ;;  %v897_v58 = vpop.f32.mrb[0].mxu0 }
 0x192   : > { %v1061_v59 = vadd.f32 %v897_v58, %v529_v57  ;;  %v531_v60 = vpop.f32.mrb[1].mxu1  ;;  %v899_v61 = vpop.f32.mrb[1].mxu0 }
 0x193   : > { %v1062_v0 = vadd.f32 %v899_v61, %v531_v60  ;;  %v533_v62 = vpop.f32.mrb[2].mxu1  ;;  %v901_v63 = vpop.f32.mrb[2].mxu0 }
 0x194   : > { %v912_v1 = vmul.f32 %v1061_v59, %v910_v55  ;;  %v534_v2 = vpop.f32.mrb[3].mxu1  ;;  %v902_v3 = vpop.f32.mrb[3].mxu0 }
 0x195   : > { %v913_v4 = vmul.f32 %v1062_v0, %v910_v55 }
 0x196   : > { %v920_v5 = vadd.f32 %v918_v56, %v912_v1 }
 0x197   : > { %v921_v6 = vadd.f32 %v918_v56, %v913_v4 }
 0x198   : > { %v1052_v7 = vmul.f32 -1.442695, %v920_v5 }
 0x199   : > { %v1053_v8 = vmul.f32 -1.442695, %v921_v6 }
 0x19a   : > { %1142 = vpow2.f32 %v1052_v7 }
 0x19b   : > { %1144 = vpow2.f32 %v1053_v8 }
 0x1a4   : > { %v1143_v9 = vpop.eup %1142 }
 0x1a5   : > { %v1145_v10 = vpop.eup %1144  ;;  %v928_v14 = vadd.f32 1.0, %v1143_v9 }
 0x1a6   : > { %v929_v15 = vadd.f32 1.0, %v1145_v10 }
 0x1a7   : > { %1146 = vrcp.f32 %v928_v14 }
 0x1a8   : > { %1148 = vrcp.f32 %v929_v15 }
 0x1b1   : > { %v1147_v16 = vpop.eup %1146 }
 0x1b2   : > { %v1149_v17 = vpop.eup %1148  ;;  %v934_v18 = vmul.f32 %v1147_v16, %v920_v5 }
 0x1b3   : > { %v935_v19 = vmul.f32 %v1149_v17, %v921_v6 }
 0x1b4   : > { %936 = vst [vmem:[%s217_s11] sm:$0xff] %v934_v18 }
 0x1b5   : > { %937 = vst [vmem:[%s217_s11 + $0x8] sm:$0xff] %v935_v19 }
 0x1b6   : > { %1163 = shalt.err (!%p1160_p3)
}
 0x1b7   : > { %s1164_s26 = scalar_lea.hbm %s1453_s15, 256  ;;  %s1168_s7 = scalar_lea.hbm %s1500_s5, 512 }
 0x1b8   : > { %p1165_p4 = scmp.ne.s32.totalorder %s1453_s15, %s1164_s26  ;;  %p1169_p9 = scmp.lt.u32.totalorder %s1453_s15, %s1500_s5 }
 0x1b9   : > { %p1170_p10 = scmp.lt.u32.totalorder %s1168_s7, %s1164_s26  ;;  %p1172_p12 = scmp.lt.u32.totalorder %s1164_s26, %s1453_s15 }
 0x1ba   : > { %p1166_p7 = pnand %p1165_p4, %p1292_p5 }
 0x1bb   : > { %p1171_p11 = por %p1170_p10, %p1169_p9 }
 0x1bc   : > { %p1167_p8 = pneg %p1166_p7 }
 0x1bd   : > { %p1173_p13 = por %p1172_p12, %p1171_p11 }
 0x1bf   : > { %p1174_p0 = pnand %p1173_p13, %p1167_p8 }
 0x1c1   : > { %1177 = shalt.err (!%p1174_p0)
}
 0x1c2   : > { %1091 = dma.vmem_to_hbm [thread:$0]  (%p1292_p5), %s1455_s12, 256, %s1453_s15, %s939_s16  }
 0x1c3 PF: > { %p1097_p1 = scmp.ge.s32.totalorder %s1212_s21, 2  ;;  %s965_s10 = sand.u32 1, %s1200_s18  }
 0x1c4   : > { %s966_s11 = scalar_lea.sflag [#allocation3], %s965_s10 }
 0x1c5   : > { %p1094_p2 = pnand %p1097_p1, %p1296_p6 }
 0x1c7   : > { %1195 = dma.done.wait (!%p1094_p2), %s966_s11, 256  }
 0x1c8   : > { %1197 = vsyncadd (!%p1094_p2), %s966_s11, 4294967040  ;;  %p15_p3 = scmp.ge.s32.totalorder %s1279_s24, 4   ;;  %s1503_s18 = smov %s1204_s19 }
 0x1c9   : > { %s1504_s19 = smov %s1208_s20  ;;  %s1505_s20 = smov %s1290_s27 }
 0x1ca   : > { %s1506_s21 = smov %s1279_s24  ;;  %17 = sbr.rel (!%p15_p3) target bundleno = 3 (0x3), region = 90 }
 0x1d1   :  { %971 = vsyncpa [#allocation3], 1 }
 0x1d2   :  { %973 = vsyncpa [#allocation3 + $0x1], 1 }

</bundles_post_ra>
